<compile_context>
chip_gen: v5e
topology: v5e:2x2
jax: 0.10.0
libtpu: 0.0.40
codegen_flags: <defaults>
</compile_context>

<pallas_src>
import math
import jax
import jax.numpy as jnp
from jax import lax
from jax.experimental import pallas as pl
from jax.experimental.pallas import tpu as pltpu


def _round_up(v, m):
    return (v + m - 1) // m * m


def lstm_dense_kernel(x_ref, w_ih_t_ref, w_hh_t_ref, b_ref, w_d_t_ref, b_d_ref,
                      out_ref, gx_ref, h_all_ref, h_state_ref, c_state_ref):
    # x_ref:       (chunk, I)    current time-chunk of the input (matmul dtype)
    # w_ih_t_ref:  (I, 4H)       W_ih^T
    # w_hh_t_ref:  (H, 4H)       W_hh^T (unpadded)
    # b_ref:       (1, 4H)       b_ih + b_hh (f32)
    # w_d_t_ref:   (H, O)        W_dense^T
    # b_d_ref:     (1, O)        b_dense (f32)
    # out_ref:     (chunk, O)
    # gx_ref:      (chunk, 4H)   f32 scratch: hoisted input projection
    # h_all_ref:   (chunk, H)    f32 scratch: per-step hidden states of this chunk
    # h_state_ref: (1, H)        f32 scratch: recurrent h, persists across chunks
    # c_state_ref: (1, H)        f32 scratch: recurrent c, persists across chunks
    chunk = x_ref.shape[0]
    H = w_hh_t_ref.shape[0]

    # First chunk of the sequence: zero initial state (h_0 = c_0 = 0).
    @pl.when(pl.program_id(0) == 0)
    def _():
        h_state_ref[...] = jnp.zeros(h_state_ref.shape, h_state_ref.dtype)
        c_state_ref[...] = jnp.zeros(c_state_ref.shape, c_state_ref.dtype)

    # (1) Hoisted input projection + bias for the whole chunk: one matmul.
    gx_ref[...] = (
        jnp.dot(x_ref[...], w_ih_t_ref[...], preferred_element_type=jnp.float32)
        + b_ref[...]
    )

    # Loop-invariant recurrent weight, loaded once outside the recurrence.
    # TODO(synk): keep W_hh^T resident in the MXU across timesteps via
    # pltpu.matmul_push_rhs / matmul_acc_lhs / matmul_pop to remove the per-step
    # weight push from the serial critical path; jnp.dot kept for portability.
    w_hh_t = w_hh_t_ref[...]
    mm_dtype = w_hh_t.dtype

    def group_step(grp, carry):
        h, c = carry                                   # (1, H) f32, vreg-carried
        row0 = pl.multiple_of(grp * 8, 8)
        gx_g = gx_ref[pl.ds(row0, 8), :]               # one aligned (8, 4H) load
        h_rows = []
        for r in range(8):                             # statically unrolled
            gates = gx_g[r:r + 1, :] + jnp.dot(
                h.astype(mm_dtype), w_hh_t, preferred_element_type=jnp.float32)
            i_g = jax.nn.sigmoid(gates[:, 0 * H:1 * H])
            f_g = jax.nn.sigmoid(gates[:, 1 * H:2 * H])
            g_g = jnp.tanh(gates[:, 2 * H:3 * H])      # tanh only on the g chunk
            o_g = jax.nn.sigmoid(gates[:, 3 * H:4 * H])
            c = f_g * c + i_g * g_g
            h = o_g * jnp.tanh(c)
            h_rows.append(h)
        # One aligned (8, H) store per group instead of 8 masked row stores.
        h_all_ref[pl.ds(row0, 8), :] = jnp.concatenate(h_rows, axis=0)
        return (h, c)

    h_fin, c_fin = lax.fori_loop(0, chunk // 8, group_step,
                                 (h_state_ref[...], c_state_ref[...]))
    h_state_ref[...] = h_fin
    c_state_ref[...] = c_fin

    # (2) Hoisted dense head: one matmul + one store for the whole chunk.
    out_ref[...] = (
        jnp.dot(h_all_ref[...].astype(mm_dtype), w_d_t_ref[...],
                preferred_element_type=jnp.float32)
        + b_d_ref[...]
    )


def lstm_dense_forward(x, params, *, matmul_dtype=jnp.bfloat16, max_chunk=256):
    """x: (1, T, input_size)  ->  (1, T, output_size)"""
    assert x.shape[0] == 1, "module hard-codes batch size 1 via h_0/c_0 shapes"
    _, T, input_size = x.shape
    w_ih, w_hh, b_ih, b_hh, w_d, b_d = (
        params["w_ih"], params["w_hh"], params["b_ih"],
        params["b_hh"], params["w_d"], params["b_d"],
    )
    H = w_hh.shape[1]
    G = 4 * H
    O = w_d.shape[0]

    # Time-chunking: chunk is a multiple of 8 (sublane tile) and divides T_pad.
    chunk = _round_up(min(max_chunk, _round_up(T, 8)), 8)
    T_pad = _round_up(T, chunk)
    n_chunks = T_pad // chunk

    x2d = x[0].astype(jnp.float32)
    if T_pad != T:
        # Zero timesteps appended at the end do not perturb h/c for t < T;
        # the corresponding output rows are sliced off below.
        x2d = jnp.pad(x2d, ((0, T_pad - T), (0, 0)))
    x2d = x2d.astype(matmul_dtype)

    w_ih_t = w_ih.T.astype(matmul_dtype)                  # (I, 4H)
    w_hh_t = w_hh.T.astype(matmul_dtype)                  # (H, 4H), unpadded
    w_d_t = w_d.T.astype(matmul_dtype)                    # (H, O), unpadded
    b = (b_ih + b_hh).reshape(1, G).astype(jnp.float32)   # (1, 4H)
    b_d2 = b_d.reshape(1, O).astype(jnp.float32)          # (1, O)

    # Explicit VMEM budget: double-buffered blocks + resident weights + scratch.
    itm = jnp.dtype(matmul_dtype).itemsize
    est = (2 * chunk * input_size * itm                   # x blocks
           + 2 * chunk * O * 4                            # out blocks
           + 2 * (input_size * G + H * G + H * O) * itm   # weights
           + 2 * (G + O) * 4                              # biases
           + chunk * G * 4 + chunk * H * 4 + 2 * H * 4)   # scratch
    vmem_limit = int(min(max(2 * est, 16 * 1024 * 1024), 64 * 1024 * 1024))

    grid_spec = pltpu.PrefetchScalarGridSpec(
        num_scalar_prefetch=0,
        grid=(n_chunks,),
        in_specs=[
            pl.BlockSpec((chunk, input_size), lambda t: (t, 0)),  # x, streamed
            pl.BlockSpec((input_size, G), lambda t: (0, 0)),      # W_ih^T
            pl.BlockSpec((H, G), lambda t: (0, 0)),               # W_hh^T
            pl.BlockSpec((1, G), lambda t: (0, 0)),               # bias
            pl.BlockSpec((H, O), lambda t: (0, 0)),               # W_dense^T
            pl.BlockSpec((1, O), lambda t: (0, 0)),               # dense bias
        ],
        out_specs=pl.BlockSpec((chunk, O), lambda t: (t, 0)),
        scratch_shapes=[
            pltpu.VMEM((chunk, G), jnp.float32),   # gx = x @ W_ih^T + b
            pltpu.VMEM((chunk, H), jnp.float32),   # hidden states of this chunk
            pltpu.VMEM((1, H), jnp.float32),       # recurrent h (persists)
            pltpu.VMEM((1, H), jnp.float32),       # recurrent c (persists)
        ],
    )

    out = pl.pallas_call(
        lstm_dense_kernel,
        out_shape=jax.ShapeDtypeStruct((T_pad, O), jnp.float32),
        grid_spec=grid_spec,
        compiler_params=pltpu.CompilerParams(
            dimension_semantics=("arbitrary",),    # sequential recurrence over T
            vmem_limit_bytes=vmem_limit,
        ),
    )(x2d, w_ih_t, w_hh_t, b, w_d_t, b_d2)

    # TODO(synk): the PyTorch module hard-codes batch=1 (h_0/c_0 shapes); with a
    # real batch dimension, add a "parallel" batch grid axis (uses the 2nd v7x
    # TensorCore) and fold the batch into the M dim of the recurrent matmul.
    return out[:T][None, :, :]                            # (1, T, O)


def lstm_dense_reference(x, params):
    """Pure-JAX reference mirroring torch.nn.LSTM + nn.Linear (batch=1)."""
    w_ih, w_hh, b_ih, b_hh, w_d, b_d = (
        params["w_ih"], params["w_hh"], params["b_ih"],
        params["b_hh"], params["w_d"], params["b_d"],
    )
    H = w_hh.shape[1]
    hp = jax.lax.Precision.HIGHEST

    def step(carry, x_t):
        h, c = carry
        gates = (jnp.dot(x_t, w_ih.T, precision=hp) + b_ih
                 + jnp.dot(h, w_hh.T, precision=hp) + b_hh)
        i = jax.nn.sigmoid(gates[0:H])
        f = jax.nn.sigmoid(gates[H:2 * H])
        g = jnp.tanh(gates[2 * H:3 * H])
        o = jax.nn.sigmoid(gates[3 * H:4 * H])
        c = f * c + i * g
        h = o * jnp.tanh(c)
        return (h, c), h

    init = (jnp.zeros((H,), jnp.float32), jnp.zeros((H,), jnp.float32))
    _, hs = lax.scan(step, init, x[0])
    out = jnp.dot(hs, w_d.T, precision=hp) + b_d
    return out[None, :, :]


def init_params(key, input_size, hidden_size, output_size):
    """Deterministic init mirroring PyTorch default U(-1/sqrt(H), 1/sqrt(H))."""
    k = 1.0 / math.sqrt(hidden_size)
    keys = jax.random.split(key, 6)
    u = lambda kk, shape: jax.random.uniform(kk, shape, jnp.float32, -k, k)
    return {
        "w_ih": u(keys[0], (4 * hidden_size, input_size)),
        "w_hh": u(keys[1], (4 * hidden_size, hidden_size)),
        "b_ih": u(keys[2], (4 * hidden_size,)),
        "b_hh": u(keys[3], (4 * hidden_size,)),
        "w_d":  u(keys[4], (output_size, hidden_size)),
        "b_d":  u(keys[5], (output_size,)),
    }


if __name__ == "__main__":
    input_size, hidden_size, output_size = 16, 32, 8
    T = 8

    key = jax.random.PRNGKey(0)
    pkey, xkey = jax.random.split(key)
    params = init_params(pkey, input_size, hidden_size, output_size)
    x = jax.random.normal(xkey, (1, T, input_size), jnp.float32)

    ref = lstm_dense_reference(x, params)

    # f32 matmul-operand path: tighter check.
    out_f32 = lstm_dense_forward(x, params, matmul_dtype=jnp.float32)
    jax.block_until_ready(out_f32)
    assert out_f32.shape == (1, T, output_size)
    err_f32 = float(jnp.max(jnp.abs(out_f32 - ref)))
    assert jnp.allclose(out_f32, ref, atol=1e-2, rtol=1e-2), f"f32 max err {err_f32}"

    # bf16 matmul-operand path (perf-review default): looser check.
    out_bf16 = lstm_dense_forward(x, params, matmul_dtype=jnp.bfloat16)
    jax.block_until_ready(out_bf16)
    err_bf16 = float(jnp.max(jnp.abs(out_bf16 - ref)))
    assert jnp.allclose(out_bf16, ref, atol=5e-2, rtol=5e-2), f"bf16 max err {err_bf16}"

    # Longer sequence exercising the multi-chunk streaming grid + tail padding.
    T2 = 40
    x2 = jax.random.normal(jax.random.PRNGKey(1), (1, T2, input_size), jnp.float32)
    out2 = lstm_dense_forward(x2, params, matmul_dtype=jnp.float32, max_chunk=16)
    jax.block_until_ready(out2)
    ref2 = lstm_dense_reference(x2, params)
    err2 = float(jnp.max(jnp.abs(out2 - ref2)))
    assert out2.shape == (1, T2, output_size)
    assert jnp.allclose(out2, ref2, atol=1e-2, rtol=1e-2), f"chunked max err {err2}"

    print("KERNEL_OK")
</pallas_src>

<mosaic_0001>
module attributes {stable_mosaic.version = 11 : i64} {
  func.func @lstm_dense_kernel(%arg0: i32, %arg1: memref<8x16xf32, #tpu.memory_space<vmem>>, %arg2: memref<16x128xf32, #tpu.memory_space<vmem>>, %arg3: memref<32x128xf32, #tpu.memory_space<vmem>>, %arg4: memref<1x128xf32, #tpu.memory_space<vmem>>, %arg5: memref<32x8xf32, #tpu.memory_space<vmem>>, %arg6: memref<1x8xf32, #tpu.memory_space<vmem>>, %arg7: memref<8x8xf32, #tpu.memory_space<vmem>>, %arg8: memref<8x128xf32, #tpu.memory_space<vmem>>, %arg9: memref<8x32xf32, #tpu.memory_space<vmem>>, %arg10: memref<1x32xf32, #tpu.memory_space<vmem>>, %arg11: memref<1x32xf32, #tpu.memory_space<vmem>>) attributes {dimension_semantics = [#tpu.dimension_semantics<arbitrary>], iteration_bounds = array<i64: 1>, scalar_prefetch = 0 : i64, scratch_operands = 4 : i64, tpu.core_type = #tpu.core_type<tc>, window_params = [{transform_indices = @transform_0, window_bounds = array<i64: 8, 16>}, {pipeline_mode = #tpu.pipeline_mode<synchronous>, transform_indices = @transform_1, window_bounds = array<i64: 16, 128>}, {pipeline_mode = #tpu.pipeline_mode<synchronous>, transform_indices = @transform_2, window_bounds = array<i64: 32, 128>}, {pipeline_mode = #tpu.pipeline_mode<synchronous>, transform_indices = @transform_3, window_bounds = array<i64: 1, 128>}, {pipeline_mode = #tpu.pipeline_mode<synchronous>, transform_indices = @transform_4, window_bounds = array<i64: 32, 8>}, {pipeline_mode = #tpu.pipeline_mode<synchronous>, transform_indices = @transform_5, window_bounds = array<i64: 1, 8>}, {transform_indices = @transform_6, window_bounds = array<i64: 8, 8>}]} {
    %c0_i32 = arith.constant 0 : i32
    %0 = arith.cmpi eq, %arg0, %c0_i32 : i32
    %1 = arith.extui %0 : i1 to i32
    %c0_i32_0 = arith.constant 0 : i32
    %2 = arith.cmpi ne, %1, %c0_i32_0 : i32
    scf.if %2 {
      %cst_62 = arith.constant 0.000000e+00 : f32
      %253 = vector.broadcast %cst_62 : f32 to vector<1x32xf32>
      %c0_63 = arith.constant 0 : index
      %c0_64 = arith.constant 0 : index
      %254 = vector.load %arg10[%c0_63, %c0_64] : memref<1x32xf32, #tpu.memory_space<vmem>>, vector<1x32xf32>
      tpu.vector_store %arg10[%c0_63, %c0_64], %253 {strides = array<i32>} : memref<1x32xf32, #tpu.memory_space<vmem>>, vector<1x32xf32>,
      %cst_65 = arith.constant 0.000000e+00 : f32
      %255 = vector.broadcast %cst_65 : f32 to vector<1x32xf32>
      %c0_66 = arith.constant 0 : index
      %c0_67 = arith.constant 0 : index
      %256 = vector.load %arg11[%c0_66, %c0_67] : memref<1x32xf32, #tpu.memory_space<vmem>>, vector<1x32xf32>
      tpu.vector_store %arg11[%c0_66, %c0_67], %255 {strides = array<i32>} : memref<1x32xf32, #tpu.memory_space<vmem>>, vector<1x32xf32>,
    } else {
    }
    %c0 = arith.constant 0 : index
    %c0_1 = arith.constant 0 : index
    %3 = vector.load %arg1[%c0, %c0_1] : memref<8x16xf32, #tpu.memory_space<vmem>>, vector<8x16xf32>
    %c0_2 = arith.constant 0 : index
    %c0_3 = arith.constant 0 : index
    %4 = vector.load %arg2[%c0_2, %c0_3] : memref<16x128xf32, #tpu.memory_space<vmem>>, vector<16x128xf32>
    %cst = arith.constant dense<0.000000e+00> : vector<8x128xf32>
    %5 = tpu.matmul %3, %4, %cst {dimension_numbers = #tpu.dot_dimension_numbers<[1], [0], [0], [1], [0, 0, 1, 1], [], []>} : vector<8x16xf32>, vector<16x128xf32>, vector<8x128xf32> -> vector<8x128xf32>
    %c0_4 = arith.constant 0 : index
    %c0_5 = arith.constant 0 : index
    %6 = vector.load %arg4[%c0_4, %c0_5] : memref<1x128xf32, #tpu.memory_space<vmem>>, vector<1x128xf32>
    %7 = vector.broadcast %6 : vector<1x128xf32> to vector<8x128xf32>
    %8 = arith.addf %5, %7 : vector<8x128xf32>
    %c0_6 = arith.constant 0 : index
    %c0_7 = arith.constant 0 : index
    %9 = vector.load %arg8[%c0_6, %c0_7] : memref<8x128xf32, #tpu.memory_space<vmem>>, vector<8x128xf32>
    tpu.vector_store %arg8[%c0_6, %c0_7], %8 {strides = array<i32>} : memref<8x128xf32, #tpu.memory_space<vmem>>, vector<8x128xf32>,
    %c0_8 = arith.constant 0 : index
    %c0_9 = arith.constant 0 : index
    %10 = vector.load %arg3[%c0_8, %c0_9] : memref<32x128xf32, #tpu.memory_space<vmem>>, vector<32x128xf32>
    %c0_10 = arith.constant 0 : index
    %c0_11 = arith.constant 0 : index
    %11 = vector.load %arg10[%c0_10, %c0_11] : memref<1x32xf32, #tpu.memory_space<vmem>>, vector<1x32xf32>
    %c0_12 = arith.constant 0 : index
    %c0_13 = arith.constant 0 : index
    %12 = vector.load %arg11[%c0_12, %c0_13] : memref<1x32xf32, #tpu.memory_space<vmem>>, vector<1x32xf32>
    %c0_i32_14 = arith.constant 0 : i32
    %c8_i32 = arith.constant 8 : i32
    %13 = arith.muli %c0_i32_14, %c8_i32 : i32
    %14 = tpu.assume_multiple %13, 8 : i32
    %15 = arith.index_cast %14 : i32 to index
    %c0_15 = arith.constant 0 : index
    %16 = vector.load %arg8[%15, %c0_15] : memref<8x128xf32, #tpu.memory_space<vmem>>, vector<8x128xf32>
    %17 = vector.extract_strided_slice %16 {offsets = [0, 0], sizes = [1, 128], strides = [1, 1]} : vector<8x128xf32> to vector<1x128xf32>
    %cst_16 = arith.constant dense<0.000000e+00> : vector<1x128xf32>
    %18 = tpu.matmul %11, %10, %cst_16 {dimension_numbers = #tpu.dot_dimension_numbers<[1], [0], [0], [1], [0, 0, 1, 1], [], []>} : vector<1x32xf32>, vector<32x128xf32>, vector<1x128xf32> -> vector<1x128xf32>
    %19 = arith.addf %17, %18 : vector<1x128xf32>
    %20 = vector.extract_strided_slice %19 {offsets = [0, 0], sizes = [1, 32], strides = [1, 1]} : vector<1x128xf32> to vector<1x32xf32>
    %21 = arith.negf %20 : vector<1x32xf32>
    %22 = math.exp %21 : vector<1x32xf32>
    %cst_17 = arith.constant 1.000000e+00 : f32
    %23 = vector.broadcast %cst_17 : f32 to vector<1x32xf32>
    %24 = arith.addf %23, %22 : vector<1x32xf32>
    %25 = arith.divf %23, %24 : vector<1x32xf32>
    %26 = vector.extract_strided_slice %19 {offsets = [0, 32], sizes = [1, 32], strides = [1, 1]} : vector<1x128xf32> to vector<1x32xf32>
    %27 = arith.negf %26 : vector<1x32xf32>
    %28 = math.exp %27 : vector<1x32xf32>
    %cst_18 = arith.constant 1.000000e+00 : f32
    %29 = vector.broadcast %cst_18 : f32 to vector<1x32xf32>
    %30 = arith.addf %29, %28 : vector<1x32xf32>
    %31 = arith.divf %29, %30 : vector<1x32xf32>
    %32 = vector.extract_strided_slice %19 {offsets = [0, 64], sizes = [1, 32], strides = [1, 1]} : vector<1x128xf32> to vector<1x32xf32>
    %33 = math.tanh %32 : vector<1x32xf32>
    %34 = vector.extract_strided_slice %19 {offsets = [0, 96], sizes = [1, 32], strides = [1, 1]} : vector<1x128xf32> to vector<1x32xf32>
    %35 = arith.negf %34 : vector<1x32xf32>
    %36 = math.exp %35 : vector<1x32xf32>
    %cst_19 = arith.constant 1.000000e+00 : f32
    %37 = vector.broadcast %cst_19 : f32 to vector<1x32xf32>
    %38 = arith.addf %37, %36 : vector<1x32xf32>
    %39 = arith.divf %37, %38 : vector<1x32xf32>
    %40 = arith.mulf %31, %12 : vector<1x32xf32>
    %41 = arith.mulf %25, %33 : vector<1x32xf32>
    %42 = arith.addf %40, %41 : vector<1x32xf32>
    %43 = math.tanh %42 : vector<1x32xf32>
    %44 = arith.mulf %39, %43 : vector<1x32xf32>
    %45 = vector.extract_strided_slice %16 {offsets = [1, 0], sizes = [1, 128], strides = [1, 1]} : vector<8x128xf32> to vector<1x128xf32>
    %cst_20 = arith.constant dense<0.000000e+00> : vector<1x128xf32>
    %46 = tpu.matmul %44, %10, %cst_20 {dimension_numbers = #tpu.dot_dimension_numbers<[1], [0], [0], [1], [0, 0, 1, 1], [], []>} : vector<1x32xf32>, vector<32x128xf32>, vector<1x128xf32> -> vector<1x128xf32>
    %47 = arith.addf %45, %46 : vector<1x128xf32>
    %48 = vector.extract_strided_slice %47 {offsets = [0, 0], sizes = [1, 32], strides = [1, 1]} : vector<1x128xf32> to vector<1x32xf32>
    %49 = arith.negf %48 : vector<1x32xf32>
    %50 = math.exp %49 : vector<1x32xf32>
    %cst_21 = arith.constant 1.000000e+00 : f32
    %51 = vector.broadcast %cst_21 : f32 to vector<1x32xf32>
    %52 = arith.addf %51, %50 : vector<1x32xf32>
    %53 = arith.divf %51, %52 : vector<1x32xf32>
    %54 = vector.extract_strided_slice %47 {offsets = [0, 32], sizes = [1, 32], strides = [1, 1]} : vector<1x128xf32> to vector<1x32xf32>
    %55 = arith.negf %54 : vector<1x32xf32>
    %56 = math.exp %55 : vector<1x32xf32>
    %cst_22 = arith.constant 1.000000e+00 : f32
    %57 = vector.broadcast %cst_22 : f32 to vector<1x32xf32>
    %58 = arith.addf %57, %56 : vector<1x32xf32>
    %59 = arith.divf %57, %58 : vector<1x32xf32>
    %60 = vector.extract_strided_slice %47 {offsets = [0, 64], sizes = [1, 32], strides = [1, 1]} : vector<1x128xf32> to vector<1x32xf32>
    %61 = math.tanh %60 : vector<1x32xf32>
    %62 = vector.extract_strided_slice %47 {offsets = [0, 96], sizes = [1, 32], strides = [1, 1]} : vector<1x128xf32> to vector<1x32xf32>
    %63 = arith.negf %62 : vector<1x32xf32>
    %64 = math.exp %63 : vector<1x32xf32>
    %cst_23 = arith.constant 1.000000e+00 : f32
    %65 = vector.broadcast %cst_23 : f32 to vector<1x32xf32>
    %66 = arith.addf %65, %64 : vector<1x32xf32>
    %67 = arith.divf %65, %66 : vector<1x32xf32>
    %68 = arith.mulf %59, %42 : vector<1x32xf32>
    %69 = arith.mulf %53, %61 : vector<1x32xf32>
    %70 = arith.addf %68, %69 : vector<1x32xf32>
    %71 = math.tanh %70 : vector<1x32xf32>
    %72 = arith.mulf %67, %71 : vector<1x32xf32>
    %73 = vector.extract_strided_slice %16 {offsets = [2, 0], sizes = [1, 128], strides = [1, 1]} : vector<8x128xf32> to vector<1x128xf32>
    %cst_24 = arith.constant dense<0.000000e+00> : vector<1x128xf32>
    %74 = tpu.matmul %72, %10, %cst_24 {dimension_numbers = #tpu.dot_dimension_numbers<[1], [0], [0], [1], [0, 0, 1, 1], [], []>} : vector<1x32xf32>, vector<32x128xf32>, vector<1x128xf32> -> vector<1x128xf32>
    %75 = arith.addf %73, %74 : vector<1x128xf32>
    %76 = vector.extract_strided_slice %75 {offsets = [0, 0], sizes = [1, 32], strides = [1, 1]} : vector<1x128xf32> to vector<1x32xf32>
    %77 = arith.negf %76 : vector<1x32xf32>
    %78 = math.exp %77 : vector<1x32xf32>
    %cst_25 = arith.constant 1.000000e+00 : f32
    %79 = vector.broadcast %cst_25 : f32 to vector<1x32xf32>
    %80 = arith.addf %79, %78 : vector<1x32xf32>
    %81 = arith.divf %79, %80 : vector<1x32xf32>
    %82 = vector.extract_strided_slice %75 {offsets = [0, 32], sizes = [1, 32], strides = [1, 1]} : vector<1x128xf32> to vector<1x32xf32>
    %83 = arith.negf %82 : vector<1x32xf32>
    %84 = math.exp %83 : vector<1x32xf32>
    %cst_26 = arith.constant 1.000000e+00 : f32
    %85 = vector.broadcast %cst_26 : f32 to vector<1x32xf32>
    %86 = arith.addf %85, %84 : vector<1x32xf32>
    %87 = arith.divf %85, %86 : vector<1x32xf32>
    %88 = vector.extract_strided_slice %75 {offsets = [0, 64], sizes = [1, 32], strides = [1, 1]} : vector<1x128xf32> to vector<1x32xf32>
    %89 = math.tanh %88 : vector<1x32xf32>
    %90 = vector.extract_strided_slice %75 {offsets = [0, 96], sizes = [1, 32], strides = [1, 1]} : vector<1x128xf32> to vector<1x32xf32>
    %91 = arith.negf %90 : vector<1x32xf32>
    %92 = math.exp %91 : vector<1x32xf32>
    %cst_27 = arith.constant 1.000000e+00 : f32
    %93 = vector.broadcast %cst_27 : f32 to vector<1x32xf32>
    %94 = arith.addf %93, %92 : vector<1x32xf32>
    %95 = arith.divf %93, %94 : vector<1x32xf32>
    %96 = arith.mulf %87, %70 : vector<1x32xf32>
    %97 = arith.mulf %81, %89 : vector<1x32xf32>
    %98 = arith.addf %96, %97 : vector<1x32xf32>
    %99 = math.tanh %98 : vector<1x32xf32>
    %100 = arith.mulf %95, %99 : vector<1x32xf32>
    %101 = vector.extract_strided_slice %16 {offsets = [3, 0], sizes = [1, 128], strides = [1, 1]} : vector<8x128xf32> to vector<1x128xf32>
    %cst_28 = arith.constant dense<0.000000e+00> : vector<1x128xf32>
    %102 = tpu.matmul %100, %10, %cst_28 {dimension_numbers = #tpu.dot_dimension_numbers<[1], [0], [0], [1], [0, 0, 1, 1], [], []>} : vector<1x32xf32>, vector<32x128xf32>, vector<1x128xf32> -> vector<1x128xf32>
    %103 = arith.addf %101, %102 : vector<1x128xf32>
    %104 = vector.extract_strided_slice %103 {offsets = [0, 0], sizes = [1, 32], strides = [1, 1]} : vector<1x128xf32> to vector<1x32xf32>
    %105 = arith.negf %104 : vector<1x32xf32>
    %106 = math.exp %105 : vector<1x32xf32>
    %cst_29 = arith.constant 1.000000e+00 : f32
    %107 = vector.broadcast %cst_29 : f32 to vector<1x32xf32>
    %108 = arith.addf %107, %106 : vector<1x32xf32>
    %109 = arith.divf %107, %108 : vector<1x32xf32>
    %110 = vector.extract_strided_slice %103 {offsets = [0, 32], sizes = [1, 32], strides = [1, 1]} : vector<1x128xf32> to vector<1x32xf32>
    %111 = arith.negf %110 : vector<1x32xf32>
    %112 = math.exp %111 : vector<1x32xf32>
    %cst_30 = arith.constant 1.000000e+00 : f32
    %113 = vector.broadcast %cst_30 : f32 to vector<1x32xf32>
    %114 = arith.addf %113, %112 : vector<1x32xf32>
    %115 = arith.divf %113, %114 : vector<1x32xf32>
    %116 = vector.extract_strided_slice %103 {offsets = [0, 64], sizes = [1, 32], strides = [1, 1]} : vector<1x128xf32> to vector<1x32xf32>
    %117 = math.tanh %116 : vector<1x32xf32>
    %118 = vector.extract_strided_slice %103 {offsets = [0, 96], sizes = [1, 32], strides = [1, 1]} : vector<1x128xf32> to vector<1x32xf32>
    %119 = arith.negf %118 : vector<1x32xf32>
    %120 = math.exp %119 : vector<1x32xf32>
    %cst_31 = arith.constant 1.000000e+00 : f32
    %121 = vector.broadcast %cst_31 : f32 to vector<1x32xf32>
    %122 = arith.addf %121, %120 : vector<1x32xf32>
    %123 = arith.divf %121, %122 : vector<1x32xf32>
    %124 = arith.mulf %115, %98 : vector<1x32xf32>
    %125 = arith.mulf %109, %117 : vector<1x32xf32>
    %126 = arith.addf %124, %125 : vector<1x32xf32>
    %127 = math.tanh %126 : vector<1x32xf32>
    %128 = arith.mulf %123, %127 : vector<1x32xf32>
    %129 = vector.extract_strided_slice %16 {offsets = [4, 0], sizes = [1, 128], strides = [1, 1]} : vector<8x128xf32> to vector<1x128xf32>
    %cst_32 = arith.constant dense<0.000000e+00> : vector<1x128xf32>
    %130 = tpu.matmul %128, %10, %cst_32 {dimension_numbers = #tpu.dot_dimension_numbers<[1], [0], [0], [1], [0, 0, 1, 1], [], []>} : vector<1x32xf32>, vector<32x128xf32>, vector<1x128xf32> -> vector<1x128xf32>
    %131 = arith.addf %129, %130 : vector<1x128xf32>
    %132 = vector.extract_strided_slice %131 {offsets = [0, 0], sizes = [1, 32], strides = [1, 1]} : vector<1x128xf32> to vector<1x32xf32>
    %133 = arith.negf %132 : vector<1x32xf32>
    %134 = math.exp %133 : vector<1x32xf32>
    %cst_33 = arith.constant 1.000000e+00 : f32
    %135 = vector.broadcast %cst_33 : f32 to vector<1x32xf32>
    %136 = arith.addf %135, %134 : vector<1x32xf32>
    %137 = arith.divf %135, %136 : vector<1x32xf32>
    %138 = vector.extract_strided_slice %131 {offsets = [0, 32], sizes = [1, 32], strides = [1, 1]} : vector<1x128xf32> to vector<1x32xf32>
    %139 = arith.negf %138 : vector<1x32xf32>
    %140 = math.exp %139 : vector<1x32xf32>
    %cst_34 = arith.constant 1.000000e+00 : f32
    %141 = vector.broadcast %cst_34 : f32 to vector<1x32xf32>
    %142 = arith.addf %141, %140 : vector<1x32xf32>
    %143 = arith.divf %141, %142 : vector<1x32xf32>
    %144 = vector.extract_strided_slice %131 {offsets = [0, 64], sizes = [1, 32], strides = [1, 1]} : vector<1x128xf32> to vector<1x32xf32>
    %145 = math.tanh %144 : vector<1x32xf32>
    %146 = vector.extract_strided_slice %131 {offsets = [0, 96], sizes = [1, 32], strides = [1, 1]} : vector<1x128xf32> to vector<1x32xf32>
    %147 = arith.negf %146 : vector<1x32xf32>
    %148 = math.exp %147 : vector<1x32xf32>
    %cst_35 = arith.constant 1.000000e+00 : f32
    %149 = vector.broadcast %cst_35 : f32 to vector<1x32xf32>
    %150 = arith.addf %149, %148 : vector<1x32xf32>
    %151 = arith.divf %149, %150 : vector<1x32xf32>
    %152 = arith.mulf %143, %126 : vector<1x32xf32>
    %153 = arith.mulf %137, %145 : vector<1x32xf32>
    %154 = arith.addf %152, %153 : vector<1x32xf32>
    %155 = math.tanh %154 : vector<1x32xf32>
    %156 = arith.mulf %151, %155 : vector<1x32xf32>
    %157 = vector.extract_strided_slice %16 {offsets = [5, 0], sizes = [1, 128], strides = [1, 1]} : vector<8x128xf32> to vector<1x128xf32>
    %cst_36 = arith.constant dense<0.000000e+00> : vector<1x128xf32>
    %158 = tpu.matmul %156, %10, %cst_36 {dimension_numbers = #tpu.dot_dimension_numbers<[1], [0], [0], [1], [0, 0, 1, 1], [], []>} : vector<1x32xf32>, vector<32x128xf32>, vector<1x128xf32> -> vector<1x128xf32>
    %159 = arith.addf %157, %158 : vector<1x128xf32>
    %160 = vector.extract_strided_slice %159 {offsets = [0, 0], sizes = [1, 32], strides = [1, 1]} : vector<1x128xf32> to vector<1x32xf32>
    %161 = arith.negf %160 : vector<1x32xf32>
    %162 = math.exp %161 : vector<1x32xf32>
    %cst_37 = arith.constant 1.000000e+00 : f32
    %163 = vector.broadcast %cst_37 : f32 to vector<1x32xf32>
    %164 = arith.addf %163, %162 : vector<1x32xf32>
    %165 = arith.divf %163, %164 : vector<1x32xf32>
    %166 = vector.extract_strided_slice %159 {offsets = [0, 32], sizes = [1, 32], strides = [1, 1]} : vector<1x128xf32> to vector<1x32xf32>
    %167 = arith.negf %166 : vector<1x32xf32>
    %168 = math.exp %167 : vector<1x32xf32>
    %cst_38 = arith.constant 1.000000e+00 : f32
    %169 = vector.broadcast %cst_38 : f32 to vector<1x32xf32>
    %170 = arith.addf %169, %168 : vector<1x32xf32>
    %171 = arith.divf %169, %170 : vector<1x32xf32>
    %172 = vector.extract_strided_slice %159 {offsets = [0, 64], sizes = [1, 32], strides = [1, 1]} : vector<1x128xf32> to vector<1x32xf32>
    %173 = math.tanh %172 : vector<1x32xf32>
    %174 = vector.extract_strided_slice %159 {offsets = [0, 96], sizes = [1, 32], strides = [1, 1]} : vector<1x128xf32> to vector<1x32xf32>
    %175 = arith.negf %174 : vector<1x32xf32>
    %176 = math.exp %175 : vector<1x32xf32>
    %cst_39 = arith.constant 1.000000e+00 : f32
    %177 = vector.broadcast %cst_39 : f32 to vector<1x32xf32>
    %178 = arith.addf %177, %176 : vector<1x32xf32>
    %179 = arith.divf %177, %178 : vector<1x32xf32>
    %180 = arith.mulf %171, %154 : vector<1x32xf32>
    %181 = arith.mulf %165, %173 : vector<1x32xf32>
    %182 = arith.addf %180, %181 : vector<1x32xf32>
    %183 = math.tanh %182 : vector<1x32xf32>
    %184 = arith.mulf %179, %183 : vector<1x32xf32>
    %185 = vector.extract_strided_slice %16 {offsets = [6, 0], sizes = [1, 128], strides = [1, 1]} : vector<8x128xf32> to vector<1x128xf32>
    %cst_40 = arith.constant dense<0.000000e+00> : vector<1x128xf32>
    %186 = tpu.matmul %184, %10, %cst_40 {dimension_numbers = #tpu.dot_dimension_numbers<[1], [0], [0], [1], [0, 0, 1, 1], [], []>} : vector<1x32xf32>, vector<32x128xf32>, vector<1x128xf32> -> vector<1x128xf32>
    %187 = arith.addf %185, %186 : vector<1x128xf32>
    %188 = vector.extract_strided_slice %187 {offsets = [0, 0], sizes = [1, 32], strides = [1, 1]} : vector<1x128xf32> to vector<1x32xf32>
    %189 = arith.negf %188 : vector<1x32xf32>
    %190 = math.exp %189 : vector<1x32xf32>
    %cst_41 = arith.constant 1.000000e+00 : f32
    %191 = vector.broadcast %cst_41 : f32 to vector<1x32xf32>
    %192 = arith.addf %191, %190 : vector<1x32xf32>
    %193 = arith.divf %191, %192 : vector<1x32xf32>
    %194 = vector.extract_strided_slice %187 {offsets = [0, 32], sizes = [1, 32], strides = [1, 1]} : vector<1x128xf32> to vector<1x32xf32>
    %195 = arith.negf %194 : vector<1x32xf32>
    %196 = math.exp %195 : vector<1x32xf32>
    %cst_42 = arith.constant 1.000000e+00 : f32
    %197 = vector.broadcast %cst_42 : f32 to vector<1x32xf32>
    %198 = arith.addf %197, %196 : vector<1x32xf32>
    %199 = arith.divf %197, %198 : vector<1x32xf32>
    %200 = vector.extract_strided_slice %187 {offsets = [0, 64], sizes = [1, 32], strides = [1, 1]} : vector<1x128xf32> to vector<1x32xf32>
    %201 = math.tanh %200 : vector<1x32xf32>
    %202 = vector.extract_strided_slice %187 {offsets = [0, 96], sizes = [1, 32], strides = [1, 1]} : vector<1x128xf32> to vector<1x32xf32>
    %203 = arith.negf %202 : vector<1x32xf32>
    %204 = math.exp %203 : vector<1x32xf32>
    %cst_43 = arith.constant 1.000000e+00 : f32
    %205 = vector.broadcast %cst_43 : f32 to vector<1x32xf32>
    %206 = arith.addf %205, %204 : vector<1x32xf32>
    %207 = arith.divf %205, %206 : vector<1x32xf32>
    %208 = arith.mulf %199, %182 : vector<1x32xf32>
    %209 = arith.mulf %193, %201 : vector<1x32xf32>
    %210 = arith.addf %208, %209 : vector<1x32xf32>
    %211 = math.tanh %210 : vector<1x32xf32>
    %212 = arith.mulf %207, %211 : vector<1x32xf32>
    %213 = vector.extract_strided_slice %16 {offsets = [7, 0], sizes = [1, 128], strides = [1, 1]} : vector<8x128xf32> to vector<1x128xf32>
    %cst_44 = arith.constant dense<0.000000e+00> : vector<1x128xf32>
    %214 = tpu.matmul %212, %10, %cst_44 {dimension_numbers = #tpu.dot_dimension_numbers<[1], [0], [0], [1], [0, 0, 1, 1], [], []>} : vector<1x32xf32>, vector<32x128xf32>, vector<1x128xf32> -> vector<1x128xf32>
    %215 = arith.addf %213, %214 : vector<1x128xf32>
    %216 = vector.extract_strided_slice %215 {offsets = [0, 0], sizes = [1, 32], strides = [1, 1]} : vector<1x128xf32> to vector<1x32xf32>
    %217 = arith.negf %216 : vector<1x32xf32>
    %218 = math.exp %217 : vector<1x32xf32>
    %cst_45 = arith.constant 1.000000e+00 : f32
    %219 = vector.broadcast %cst_45 : f32 to vector<1x32xf32>
    %220 = arith.addf %219, %218 : vector<1x32xf32>
    %221 = arith.divf %219, %220 : vector<1x32xf32>
    %222 = vector.extract_strided_slice %215 {offsets = [0, 32], sizes = [1, 32], strides = [1, 1]} : vector<1x128xf32> to vector<1x32xf32>
    %223 = arith.negf %222 : vector<1x32xf32>
    %224 = math.exp %223 : vector<1x32xf32>
    %cst_46 = arith.constant 1.000000e+00 : f32
    %225 = vector.broadcast %cst_46 : f32 to vector<1x32xf32>
    %226 = arith.addf %225, %224 : vector<1x32xf32>
    %227 = arith.divf %225, %226 : vector<1x32xf32>
    %228 = vector.extract_strided_slice %215 {offsets = [0, 64], sizes = [1, 32], strides = [1, 1]} : vector<1x128xf32> to vector<1x32xf32>
    %229 = math.tanh %228 : vector<1x32xf32>
    %230 = vector.extract_strided_slice %215 {offsets = [0, 96], sizes = [1, 32], strides = [1, 1]} : vector<1x128xf32> to vector<1x32xf32>
    %231 = arith.negf %230 : vector<1x32xf32>
    %232 = math.exp %231 : vector<1x32xf32>
    %cst_47 = arith.constant 1.000000e+00 : f32
    %233 = vector.broadcast %cst_47 : f32 to vector<1x32xf32>
    %234 = arith.addf %233, %232 : vector<1x32xf32>
    %235 = arith.divf %233, %234 : vector<1x32xf32>
    %236 = arith.mulf %227, %210 : vector<1x32xf32>
    %237 = arith.mulf %221, %229 : vector<1x32xf32>
    %238 = arith.addf %236, %237 : vector<1x32xf32>
    %239 = math.tanh %238 : vector<1x32xf32>
    %240 = arith.mulf %235, %239 : vector<1x32xf32>
    %241 = tpu.concatenate %44, %72, %100, %128, %156, %184, %212, %240 in 0 : vector<1x32xf32>, vector<1x32xf32>, vector<1x32xf32>, vector<1x32xf32>, vector<1x32xf32>, vector<1x32xf32>, vector<1x32xf32>, vector<1x32xf32> -> vector<8x32xf32>
    %242 = arith.index_cast %14 : i32 to index
    %c0_48 = arith.constant 0 : index
    %243 = vector.load %arg9[%242, %c0_48] : memref<8x32xf32, #tpu.memory_space<vmem>>, vector<8x32xf32>
    tpu.vector_store %arg9[%242, %c0_48], %241 {strides = array<i32>} : memref<8x32xf32, #tpu.memory_space<vmem>>, vector<8x32xf32>,
    %c1_i32 = arith.constant 1 : i32
    %c0_49 = arith.constant 0 : index
    %c0_50 = arith.constant 0 : index
    %244 = vector.load %arg10[%c0_49, %c0_50] : memref<1x32xf32, #tpu.memory_space<vmem>>, vector<1x32xf32>
    tpu.vector_store %arg10[%c0_49, %c0_50], %240 {strides = array<i32>} : memref<1x32xf32, #tpu.memory_space<vmem>>, vector<1x32xf32>,
    %c0_51 = arith.constant 0 : index
    %c0_52 = arith.constant 0 : index
    %245 = vector.load %arg11[%c0_51, %c0_52] : memref<1x32xf32, #tpu.memory_space<vmem>>, vector<1x32xf32>
    tpu.vector_store %arg11[%c0_51, %c0_52], %238 {strides = array<i32>} : memref<1x32xf32, #tpu.memory_space<vmem>>, vector<1x32xf32>,
    %c0_53 = arith.constant 0 : index
    %c0_54 = arith.constant 0 : index
    %246 = vector.load %arg9[%c0_53, %c0_54] : memref<8x32xf32, #tpu.memory_space<vmem>>, vector<8x32xf32>
    %c0_55 = arith.constant 0 : index
    %c0_56 = arith.constant 0 : index
    %247 = vector.load %arg5[%c0_55, %c0_56] : memref<32x8xf32, #tpu.memory_space<vmem>>, vector<32x8xf32>
    %cst_57 = arith.constant dense<0.000000e+00> : vector<8x8xf32>
    %248 = tpu.matmul %246, %247, %cst_57 {dimension_numbers = #tpu.dot_dimension_numbers<[1], [0], [0], [1], [0, 0, 1, 1], [], []>} : vector<8x32xf32>, vector<32x8xf32>, vector<8x8xf32> -> vector<8x8xf32>
    %c0_58 = arith.constant 0 : index
    %c0_59 = arith.constant 0 : index
    %249 = vector.load %arg6[%c0_58, %c0_59] : memref<1x8xf32, #tpu.memory_space<vmem>>, vector<1x8xf32>
    %250 = vector.broadcast %249 : vector<1x8xf32> to vector<8x8xf32>
    %251 = arith.addf %248, %250 : vector<8x8xf32>
    %c0_60 = arith.constant 0 : index
    %c0_61 = arith.constant 0 : index
    %252 = vector.load %arg7[%c0_60, %c0_61] : memref<8x8xf32, #tpu.memory_space<vmem>>, vector<8x8xf32>
    tpu.vector_store %arg7[%c0_60, %c0_61], %251 {strides = array<i32>} : memref<8x8xf32, #tpu.memory_space<vmem>>, vector<8x8xf32>,
    return
  }
  func.func @transform_0(%arg0: i32) -> (i32, i32) {
    %c0_i32 = arith.constant 0 : i32
    %c0_i32_0 = arith.constant 0 : i32
    return %arg0, %c0_i32 : i32, i32
  }
  func.func @transform_1(%arg0: i32) -> (i32, i32) {
    %c0_i32 = arith.constant 0 : i32
    %c0_i32_0 = arith.constant 0 : i32
    %c0_i32_1 = arith.constant 0 : i32
    return %c0_i32, %c0_i32_0 : i32, i32
  }
  func.func @transform_2(%arg0: i32) -> (i32, i32) {
    %c0_i32 = arith.constant 0 : i32
    %c0_i32_0 = arith.constant 0 : i32
    %c0_i32_1 = arith.constant 0 : i32
    return %c0_i32, %c0_i32_0 : i32, i32
  }
  func.func @transform_3(%arg0: i32) -> (i32, i32) {
    %c0_i32 = arith.constant 0 : i32
    %c0_i32_0 = arith.constant 0 : i32
    %c0_i32_1 = arith.constant 0 : i32
    return %c0_i32, %c0_i32_0 : i32, i32
  }
  func.func @transform_4(%arg0: i32) -> (i32, i32) {
    %c0_i32 = arith.constant 0 : i32
    %c0_i32_0 = arith.constant 0 : i32
    %c0_i32_1 = arith.constant 0 : i32
    return %c0_i32, %c0_i32_0 : i32, i32
  }
  func.func @transform_5(%arg0: i32) -> (i32, i32) {
    %c0_i32 = arith.constant 0 : i32
    %c0_i32_0 = arith.constant 0 : i32
    %c0_i32_1 = arith.constant 0 : i32
    return %c0_i32, %c0_i32_0 : i32, i32
  }
  func.func @transform_6(%arg0: i32) -> (i32, i32) {
    %c0_i32 = arith.constant 0 : i32
    %c0_i32_0 = arith.constant 0 : i32
    return %arg0, %c0_i32 : i32, i32
  }
}

</mosaic_0001>

<bundles_post_ra>
// kernel: tpu_custom_call.1
= control target key start
LH: loop header
LB: loop body
LE: loop exit
PB: predicated region body
PF: predicated region fallthrough
CT: control target
= control target key end

     0   :  { %11 = vsyncpa [#allocation7], 0  ;;  %s1010_s0 = inlined_call_operand.vmem [shape: f32[8,16], index: 0, kind: input, shape index: {}]   ;;  %s1011_s1 = inlined_call_operand.hbm [shape: f32[16,128], index: 1, kind: input, shape index: {}]   ;;  %s1012_s2 = inlined_call_operand.vmem [shape: f32[32,128], index: 2, kind: input, shape index: {}]   ;;  %s1013_s3 = inlined_call_operand.vmem [shape: f32[1,128], index: 3, kind: input, shape index: {}]   ;;  %s1014_s4 = inlined_call_operand.vmem [shape: f32[32,8], index: 4, kind: input, shape index: {}]   ;;  %s1015_s5 = inlined_call_operand.vmem [shape: f32[1,8], index: 5, kind: input, shape index: {}]   ;;  %s1016_s6 = inlined_call_operand.hbm [shape: f32[8,8], index: 6, kind: output, shape index: {}]  }
   0x1   :  { %12 = vsyncpa [#allocation8], 0  ;;  %s19_s23 = sshll.u32 %s1011_s1, 4  ;;  %s868_s24 = smov [#allocation6]   ;;  %s20_s23 = int_to_ptr.hbm [resolvable:$true] %s19_s23 }
   0x2   :  { %s21_s25 = sshll.u32 %s868_s24, 4  ;;  %s869_s26 = smov 128   ;;  %s22_s25 = int_to_ptr.vmem [resolvable:$true] %s21_s25 }
   0x3   :  { %s870_s27 = smov 8  }
   0x4   :  { %27 = dma.hbm_to_vmem [thread:$0]  %s20_s23, 256, %s22_s25, [#allocation7], %s869_s26, %s869_s26, %s870_s27  }
   0x5   :  { %864 = dma.done.wait [#allocation7], 256  }
   0x6   :  { %865 = vsyncadd [#allocation7], 4294967040  ;;  %vm44_vm0 = vcmask 253952   ;;  %v871_v0 = vmov 0.0   ;;  %v82_v1 = vld [vmem:[%s1012_s2 + $0x18] sm:$0xff]  ;;  %v81_v3 = vld [vmem:[%s1012_s2 + $0x10] sm:$0xff] }
   0x7   :  { %45 = vst.msk [vmem:[#allocation4] sm:$0x1] %vm44_vm0, %v871_v0  ;;  %v49_v2 = vld [vmem:[#allocation6 + $0x8] sm:$0xff]  ;;  %102 = vmatpush.msra.mxu1 %v82_v1  ;;  %v48_v4 = vld [vmem:[#allocation6] sm:$0xff]  ;;  %v47_v5 = vld [vmem:[%s1010_s0] sm:$0xff]  ;;  %vm54_vm1 = vcmask 130048   ;;  %170 = vmatpush.msra.mxu2 %v82_v1 }
   0x8   :  { %46 = vst.msk [vmem:[#allocation5] sm:$0x1] %vm44_vm0, %v871_v0  ;;  %72 = vmatpush.msra.mxu0 %v49_v2  ;;  %v80_v6 = vld [vmem:[%s1012_s2 + $0x8] sm:$0xff]  ;;  %240 = vmatpush.msra.mxu3 %v82_v1  ;;  %v79_v7 = vld [vmem:[%s1012_s2] sm:$0xff]  ;;  %vm86_vm2 = vcmask 261120   ;;  %s872_s13 = smov 64  }
   0x9   :  { %103 = vmatpush.msra.mxu1 %v81_v3  ;;  %171 = vmatpush.msra.mxu2 %v81_v3  ;;  %v749_v9 = vld [vmem:[%s1013_s3] ss:$0 sm:$0xff]  ;;  %s873_s14 = smov 32   ;;  %vm642_vm15 = vcmask 1040384   ;;  %vm644_vm0 = vcmask 1041408   ;;  %s874_s3 = smov 96  }
   0xa   :  { %73 = vmatpush.msra.mxu0 %v48_v4  ;;  %241 = vmatpush.msra.mxu3 %v81_v3  ;;  %s875_s25 = smov [#allocation9]  }
   0xb   :  { %723 = vmatmul.msk.f32.vlgmr.msra.gmra.mxu0 %vm54_vm1, %v47_v5  ;;  %104 = vmatpush.msra.mxu1 %v80_v6  ;;  %s711_s26 = sshll.u32 %s875_s25, 4  ;;  %s712_s26 = int_to_ptr.vmem [resolvable:$true] %s711_s26 }
   0xc   :  { %172 = vmatpush.msra.mxu2 %v80_v6  ;;  %310 = vmatpush.msrb.mxu0 %v82_v1 }
   0xd   :  { %105 = vmatpush.msra.mxu1 %v79_v7  ;;  %242 = vmatpush.msra.mxu3 %v80_v6 }
   0xe   :  { %v83_v8 = vld [vmem:[#allocation4] sm:$0x1]  ;;  %173 = vmatpush.msra.mxu2 %v79_v7  ;;  %311 = vmatpush.msrb.mxu0 %v81_v3 }
   0xf   :  { %724 = vmatmul.msk.f32.vlgmr.msra.gmra.mxu1 %vm86_vm2, %v83_v8  ;;  %243 = vmatpush.msra.mxu3 %v79_v7  ;;  %v750_v15 = vld [vmem:[#allocation5] ss:$0 sm:$0xff] }
  0x10   :  { %380 = vmatpush.msrb.mxu1 %v82_v1  ;;  %450 = vmatpush.msrb.mxu2 %v82_v1 }
  0x11   :  { %312 = vmatpush.msrb.mxu0 %v80_v6  ;;  %520 = vmatpush.msrb.mxu3 %v82_v1 }
  0x12   :  { %381 = vmatpush.msrb.mxu1 %v81_v3  ;;  %451 = vmatpush.msrb.mxu2 %v81_v3 }
  0x13   :  { %313 = vmatpush.msrb.mxu0 %v79_v7  ;;  %521 = vmatpush.msrb.mxu3 %v81_v3 }
  0x14   :  { %382 = vmatpush.msrb.mxu1 %v80_v6  ;;  %452 = vmatpush.msrb.mxu2 %v80_v6 }
  0x15   :  { %522 = vmatpush.msrb.mxu3 %v80_v6  ;;  %590 = vmatpush.msra.mxu0 %v82_v1 }
  0x16   :  { %383 = vmatpush.msrb.mxu1 %v79_v7  ;;  %453 = vmatpush.msrb.mxu2 %v79_v7 }
  0x17   :  { %523 = vmatpush.msrb.mxu3 %v79_v7  ;;  %591 = vmatpush.msra.mxu0 %v81_v3 }
  0x19   :  { %592 = vmatpush.msra.mxu0 %v80_v6 }
  0x1b   :  { %593 = vmatpush.msra.mxu0 %v79_v7 }
  0x88   :  { %v75_v10 = vpop.f32.mrf.mxu0 }
  0x89   :  { %v933_v11 = vadd.f32 %v749_v9, %v75_v10 }
  0x8c   :  { %v107_v12 = vpop.f32.mrf.mxu1 }
  0x8d   :  { %v110_v13 = vadd.f32 %v107_v12, %v933_v11 }
  0x8f   :  { %752 = vtanh.f32 %v110_v13  ;;  %v725_v16 = vmul.f32 -1.442695, %v110_v13 }
  0x91   :  { %754 = vpow2.f32 %v725_v16 }
  0x95   :  { %v753_v14 = vpop.eup %752 }
  0x96   :  { %138 = vrot.lane.b32.xlu0 %v753_v14, %s872_s13 }
  0x97   :  { %v755_v17 = vpop.eup %754 }
  0x98   :  { %v114_v18 = vadd.f32 1.0, %v755_v17 }
  0x9a   :  { %756 = vrcp.f32 %v114_v18  ;;  %v126_v24 = vand.u32 2147483648, %v114_v18  ;;  %vm120_vm4 = vweird.f32 %v114_v18  ;;  %v124_v25 = vand.u32 2147483647, %v114_v18 }
  0x9c   :  { %v127_v27 = vor.u32 1.1754944e-38, %v126_v24  ;;  %vm125_vm6 = vcmp.eq.f32.partialorder %v124_v25, 8.507059e+37 }
  0x9e   :  { %133 = vrot.lane.b32.xlu0 %v750_v15, %s873_s14 }
  0xa0   :  { %v757_v19 = vpop.eup %756 }
  0xa1   :  { %v116_v20 = vmul.f32 %v757_v19, %v114_v18  ;;  %vm121_vm3 = vweird.f32 %v757_v19 }
  0xa2   :  { %vm122_vm5 = vmor %vm120_vm4, %vm121_vm3 }
  0xa3   :  { %v117_v21 = vsub.f32 1.0, %v116_v20 }
  0xa5   :  { %v118_v22 = vmul.f32 %v757_v19, %v117_v21 }
  0xa7   :  { %v119_v23 = vadd.f32 %v757_v19, %v118_v22 }
  0xa9   :  { %v123_v26 = vsel %vm122_vm5, %v757_v19, %v119_v23 }
  0xaa   :  { %v128_v29 = vsel %vm125_vm6, %v127_v27, %v123_v26  ;;  %vm646_vm6 = vcmask 1042432  }
 0x108   :  { %v139_v28 = vpop.permute.xlu0 %138 }
 0x109   :  { %v141_v30 = vmul.f32 %v139_v28, %v128_v29 }
 0x10b   :  { %143 = vrot.lane.b32.xlu1 %v141_v30, %s873_s14 }
 0x110   :  { %v134_v31 = vpop.permute.xlu0 %133 }
 0x111   :  { %v136_v32 = vmul.f32 %v134_v31, %v128_v29 }
 0x17d   :  { %v144_v33 = vpop.permute.xlu1 %143 }
 0x17e   :  { %v146_v34 = vadd.f32 %v144_v33, %v136_v32 }
 0x180   :  { %758 = vtanh.f32 %v146_v34  ;;  %v203_v58 = vrot.slane %v146_v34, 7 }
 0x186   :  { %v759_v35 = vpop.eup %758 }
 0x187   :  { %149 = vrot.lane.b32.xlu1 %v759_v35, %s872_s13 }
 0x1f9   :  { %v150_v36 = vpop.permute.xlu1 %149 }
 0x1fa   :  { %v940_v37 = vmul.f32 %v150_v36, %v128_v29 }
 0x1fc   :  { %154 = vrot.lane.b32.xlu2 %v940_v37, %s873_s14 }
 0x256   :  { %v155_v38 = vpop.permute.xlu2 %154 }
 0x257   :  { %726 = vmatmul.msk.f32.vlgmr.msra.gmra.mxu2 %vm86_vm2, %v155_v38 }
 0x2da   :  { %v175_v39 = vpop.f32.mrf.mxu2 }
 0x2db   :  { %v179_v40 = vrot.slane %v175_v39, 7 }
 0x2dd   :  { %v181_v41 = vadd.f32 %v179_v40, %v933_v11 }
 0x2df   :  { %760 = vtanh.f32 %v181_v41  ;;  %v727_v43 = vmul.f32 -1.442695, %v181_v41 }
 0x2e1   :  { %762 = vpow2.f32 %v727_v43 }
 0x2e5   :  { %v761_v42 = vpop.eup %760 }
 0x2e6   :  { %207 = vrot.lane.b32.xlu2 %v761_v42, %s872_s13 }
 0x2e7   :  { %v763_v44 = vpop.eup %762 }
 0x2e8   :  { %v185_v45 = vadd.f32 1.0, %v763_v44 }
 0x2ea   :  { %764 = vrcp.f32 %v185_v45  ;;  %v197_v51 = vand.u32 2147483648, %v185_v45  ;;  %vm191_vm8 = vweird.f32 %v185_v45  ;;  %v195_v52 = vand.u32 2147483647, %v185_v45 }
 0x2ec   :  { %v198_v54 = vor.u32 1.1754944e-38, %v197_v51  ;;  %vm196_vm10 = vcmp.eq.f32.partialorder %v195_v52, 8.507059e+37 }
 0x2f0   :  { %v765_v46 = vpop.eup %764 }
 0x2f1   :  { %v187_v47 = vmul.f32 %v765_v46, %v185_v45  ;;  %vm192_vm7 = vweird.f32 %v765_v46 }
 0x2f2   :  { %vm193_vm9 = vmor %vm191_vm8, %vm192_vm7 }
 0x2f3   :  { %v188_v48 = vsub.f32 1.0, %v187_v47 }
 0x2f5   :  { %v189_v49 = vmul.f32 %v765_v46, %v188_v48 }
 0x2f7   :  { %v190_v50 = vadd.f32 %v765_v46, %v189_v49 }
 0x2f9   :  { %v194_v53 = vsel %vm193_vm9, %v765_v46, %v190_v50 }
 0x2fa   :  { %v199_v56 = vsel %vm196_vm10, %v198_v54, %v194_v53 }
 0x2fb   :  { %v205_v59 = vmul.f32 %v203_v58, %v199_v56 }
 0x340   :  { %v208_v55 = vpop.permute.xlu2 %207 }
 0x341   :  { %v210_v57 = vmul.f32 %v208_v55, %v199_v56 }
 0x343   :  { %212 = vrot.lane.b32.xlu0 %v210_v57, %s873_s14 }
 0x3b5   :  { %v213_v60 = vpop.permute.xlu0 %212 }
 0x3b6   :  { %v215_v61 = vadd.f32 %v213_v60, %v205_v59 }
 0x3b8   :  { %766 = vtanh.f32 %v215_v61  ;;  %v273_v23 = vrot.slane %v215_v61, 7 }
 0x3be   :  { %v767_v62 = vpop.eup %766 }
 0x3bf   :  { %218 = vrot.lane.b32.xlu1 %v767_v62, %s872_s13 }
 0x431   :  { %v219_v63 = vpop.permute.xlu1 %218 }
 0x432   :  { %v221_v0 = vmul.f32 %v219_v63, %v199_v56 }
 0x434   :  { %v223_v1 = vrot.slane %v221_v0, 1  ;;  %v643_v30 = vsel %vm642_vm15, %v940_v37, %v221_v0 }
 0x436   :  { %224 = vrot.lane.b32.xlu2 %v223_v1, %s873_s14 }
 0x490   :  { %v225_v2 = vpop.permute.xlu2 %224 }
 0x491   :  { %728 = vmatmul.msk.f32.vlgmr.msra.gmra.mxu3 %vm86_vm2, %v225_v2 }
 0x514   :  { %v245_v3 = vpop.f32.mrf.mxu3 }
 0x515   :  { %v249_v4 = vrot.slane %v245_v3, 6 }
 0x517   :  { %v251_v5 = vadd.f32 %v249_v4, %v933_v11 }
 0x519   :  { %768 = vtanh.f32 %v251_v5  ;;  %v729_v7 = vmul.f32 -1.442695, %v251_v5 }
 0x51b   :  { %770 = vpow2.f32 %v729_v7 }
 0x51f   :  { %v769_v6 = vpop.eup %768 }
 0x520   :  { %277 = vrot.lane.b32.xlu0 %v769_v6, %s872_s13 }
 0x521   :  { %v771_v8 = vpop.eup %770 }
 0x522   :  { %v255_v9 = vadd.f32 1.0, %v771_v8 }
 0x524   :  { %772 = vrcp.f32 %v255_v9  ;;  %v267_v16 = vand.u32 2147483648, %v255_v9  ;;  %vm261_vm12 = vweird.f32 %v255_v9  ;;  %v265_v17 = vand.u32 2147483647, %v255_v9 }
 0x526   :  { %v268_v19 = vor.u32 1.1754944e-38, %v267_v16  ;;  %vm266_vm14 = vcmp.eq.f32.partialorder %v265_v17, 8.507059e+37 }
 0x52a   :  { %v773_v10 = vpop.eup %772 }
 0x52b   :  { %v257_v12 = vmul.f32 %v773_v10, %v255_v9  ;;  %vm262_vm11 = vweird.f32 %v773_v10 }
 0x52c   :  { %vm263_vm13 = vmor %vm261_vm12, %vm262_vm11  ;;  %vm648_vm11 = vcmask 1043456  }
 0x52d   :  { %v258_v13 = vsub.f32 1.0, %v257_v12 }
 0x52f   :  { %v259_v14 = vmul.f32 %v773_v10, %v258_v13 }
 0x531   :  { %v260_v15 = vadd.f32 %v773_v10, %v259_v14 }
 0x533   :  { %v264_v18 = vsel %vm263_vm13, %v773_v10, %v260_v15 }
 0x534   :  { %v269_v21 = vsel %vm266_vm14, %v268_v19, %v264_v18 }
 0x535   :  { %v275_v24 = vmul.f32 %v273_v23, %v269_v21 }
 0x592   :  { %v278_v20 = vpop.permute.xlu0 %277 }
 0x593   :  { %v280_v22 = vmul.f32 %v278_v20, %v269_v21 }
 0x595   :  { %282 = vrot.lane.b32.xlu1 %v280_v22, %s873_s14 }
 0x607   :  { %v283_v25 = vpop.permute.xlu1 %282 }
 0x608   :  { %v285_v26 = vadd.f32 %v283_v25, %v275_v24 }
 0x60a   :  { %774 = vtanh.f32 %v285_v26  ;;  %v343_v53 = vrot.slane %v285_v26, 7 }
 0x610   :  { %v775_v27 = vpop.eup %774 }
 0x611   :  { %288 = vrot.lane.b32.xlu2 %v775_v27, %s872_s13 }
 0x66b   :  { %v289_v28 = vpop.permute.xlu2 %288 }
 0x66c   :  { %v291_v29 = vmul.f32 %v289_v28, %v269_v21 }
 0x66e   :  { %v293_v31 = vrot.slane %v291_v29, 2  ;;  %v645_v32 = vsel %vm644_vm0, %v643_v30, %v291_v29  ;;  %vm650_vm0 = vcmask 1044480  }
 0x670   :  { %294 = vrot.lane.b32.xlu0 %v293_v31, %s873_s14 }
 0x6e2   :  { %v295_v33 = vpop.permute.xlu0 %294 }
 0x6e3   :  { %730 = vmatmul.msk.f32.vlgmr.msrb.gmra.mxu0 %vm86_vm2, %v295_v33 }
 0x760   :  { %v315_v34 = vpop.f32.mrf.mxu0 }
 0x761   :  { %v319_v35 = vrot.slane %v315_v34, 5 }
 0x763   :  { %v321_v36 = vadd.f32 %v319_v35, %v933_v11 }
 0x765   :  { %776 = vtanh.f32 %v321_v36  ;;  %v731_v39 = vmul.f32 -1.442695, %v321_v36 }
 0x767   :  { %778 = vpow2.f32 %v731_v39 }
 0x76b   :  { %v777_v38 = vpop.eup %776 }
 0x76c   :  { %347 = vrot.lane.b32.xlu1 %v777_v38, %s872_s13 }
 0x76d   :  { %v779_v40 = vpop.eup %778 }
 0x76e   :  { %v325_v41 = vadd.f32 1.0, %v779_v40 }
 0x770   :  { %780 = vrcp.f32 %v325_v41  ;;  %v337_v46 = vand.u32 2147483648, %v325_v41  ;;  %vm331_vm3 = vweird.f32 %v325_v41  ;;  %v335_v47 = vand.u32 2147483647, %v325_v41 }
 0x772   :  { %v338_v49 = vor.u32 1.1754944e-38, %v337_v46  ;;  %vm336_vm5 = vcmp.eq.f32.partialorder %v335_v47, 8.507059e+37 }
 0x776   :  { %v781_v37 = vpop.eup %780 }
 0x777   :  { %v327_v42 = vmul.f32 %v781_v37, %v325_v41  ;;  %vm332_vm1 = vweird.f32 %v781_v37 }
 0x778   :  { %vm333_vm4 = vmor %vm331_vm3, %vm332_vm1 }
 0x779   :  { %v328_v43 = vsub.f32 1.0, %v327_v42 }
 0x77b   :  { %v329_v44 = vmul.f32 %v781_v37, %v328_v43 }
 0x77d   :  { %v330_v45 = vadd.f32 %v781_v37, %v329_v44 }
 0x77f   :  { %v334_v48 = vsel %vm333_vm4, %v781_v37, %v330_v45 }
 0x780   :  { %v339_v51 = vsel %vm336_vm5, %v338_v49, %v334_v48 }
 0x781   :  { %v345_v54 = vmul.f32 %v343_v53, %v339_v51 }
 0x7de   :  { %v348_v50 = vpop.permute.xlu1 %347 }
 0x7df   :  { %v350_v52 = vmul.f32 %v348_v50, %v339_v51 }
 0x7e1   :  { %352 = vrot.lane.b32.xlu2 %v350_v52, %s873_s14 }
 0x83b   :  { %v353_v55 = vpop.permute.xlu2 %352 }
 0x83c   :  { %v355_v56 = vadd.f32 %v353_v55, %v345_v54 }
 0x83e   :  { %782 = vtanh.f32 %v355_v56  ;;  %v413_v19 = vrot.slane %v355_v56, 7 }
 0x844   :  { %v783_v57 = vpop.eup %782 }
 0x845   :  { %358 = vrot.lane.b32.xlu0 %v783_v57, %s872_s13 }
 0x8b7   :  { %v359_v58 = vpop.permute.xlu0 %358 }
 0x8b8   :  { %v361_v59 = vmul.f32 %v359_v58, %v339_v51 }
 0x8ba   :  { %v363_v60 = vrot.slane %v361_v59, 3  ;;  %v647_v61 = vsel %vm646_vm6, %v645_v32, %v361_v59  ;;  %vm652_vm6 = vcmask 1045504  }
 0x8bc   :  { %364 = vrot.lane.b32.xlu1 %v363_v60, %s873_s14 }
 0x92e   :  { %v365_v62 = vpop.permute.xlu1 %364 }
 0x92f   :  { %732 = vmatmul.msk.f32.vlgmr.msrb.gmra.mxu1 %vm86_vm2, %v365_v62 }
 0x9ac   :  { %v385_v63 = vpop.f32.mrf.mxu1 }
 0x9ad   :  { %v389_v0 = vrot.slane %v385_v63, 4 }
 0x9af   :  { %v391_v1 = vadd.f32 %v389_v0, %v933_v11 }
 0x9b1   :  { %784 = vtanh.f32 %v391_v1  ;;  %v733_v3 = vmul.f32 -1.442695, %v391_v1 }
 0x9b3   :  { %786 = vpow2.f32 %v733_v3 }
 0x9b7   :  { %v785_v2 = vpop.eup %784 }
 0x9b8   :  { %417 = vrot.lane.b32.xlu2 %v785_v2, %s872_s13 }
 0x9b9   :  { %v787_v4 = vpop.eup %786 }
 0x9ba   :  { %v395_v5 = vadd.f32 1.0, %v787_v4 }
 0x9bc   :  { %788 = vrcp.f32 %v395_v5  ;;  %v407_v12 = vand.u32 2147483648, %v395_v5  ;;  %vm401_vm8 = vweird.f32 %v395_v5  ;;  %v405_v13 = vand.u32 2147483647, %v395_v5 }
 0x9be   :  { %v408_v15 = vor.u32 1.1754944e-38, %v407_v12  ;;  %vm406_vm10 = vcmp.eq.f32.partialorder %v405_v13, 8.507059e+37 }
 0x9c2   :  { %v789_v6 = vpop.eup %788 }
 0x9c3   :  { %v397_v7 = vmul.f32 %v789_v6, %v395_v5  ;;  %vm402_vm7 = vweird.f32 %v789_v6 }
 0x9c4   :  { %vm403_vm9 = vmor %vm401_vm8, %vm402_vm7 }
 0x9c5   :  { %v398_v8 = vsub.f32 1.0, %v397_v7 }
 0x9c7   :  { %v399_v9 = vmul.f32 %v789_v6, %v398_v8 }
 0x9c9   :  { %v400_v10 = vadd.f32 %v789_v6, %v399_v9 }
 0x9cb   :  { %v404_v14 = vsel %vm403_vm9, %v789_v6, %v400_v10 }
 0x9cc   :  { %v409_v17 = vsel %vm406_vm10, %v408_v15, %v404_v14 }
 0x9cd   :  { %v415_v20 = vmul.f32 %v413_v19, %v409_v17 }
 0xa12   :  { %v418_v16 = vpop.permute.xlu2 %417 }
 0xa13   :  { %v420_v18 = vmul.f32 %v418_v16, %v409_v17 }
 0xa15   :  { %422 = vrot.lane.b32.xlu0 %v420_v18, %s873_s14 }
 0xa87   :  { %v423_v21 = vpop.permute.xlu0 %422 }
 0xa88   :  { %v425_v22 = vadd.f32 %v423_v21, %v415_v20 }
 0xa8a   :  { %790 = vtanh.f32 %v425_v22  ;;  %v483_v48 = vrot.slane %v425_v22, 7 }
 0xa90   :  { %v791_v23 = vpop.eup %790 }
 0xa91   :  { %428 = vrot.lane.b32.xlu1 %v791_v23, %s872_s13 }
 0xb03   :  { %v429_v24 = vpop.permute.xlu1 %428 }
 0xb04   :  { %v431_v25 = vmul.f32 %v429_v24, %v409_v17 }
 0xb06   :  { %v433_v26 = vrot.slane %v431_v25, 4  ;;  %v649_v27 = vsel %vm648_vm11, %v647_v61, %v431_v25  ;;  %vm654_vm11 = vcmask 1046528  }
 0xb08   :  { %434 = vrot.lane.b32.xlu2 %v433_v26, %s873_s14 }
 0xb62   :  { %v435_v28 = vpop.permute.xlu2 %434 }
 0xb63   :  { %734 = vmatmul.msk.f32.vlgmr.msrb.gmra.mxu2 %vm86_vm2, %v435_v28 }
 0xbe6   :  { %v455_v29 = vpop.f32.mrf.mxu2 }
 0xbe7   :  { %v459_v30 = vrot.slane %v455_v29, 3 }
 0xbe9   :  { %v461_v31 = vadd.f32 %v459_v30, %v933_v11 }
 0xbeb   :  { %792 = vtanh.f32 %v461_v31  ;;  %v735_v33 = vmul.f32 -1.442695, %v461_v31 }
 0xbed   :  { %794 = vpow2.f32 %v735_v33 }
 0xbf1   :  { %v793_v32 = vpop.eup %792 }
 0xbf2   :  { %487 = vrot.lane.b32.xlu0 %v793_v32, %s872_s13 }
 0xbf3   :  { %v795_v34 = vpop.eup %794 }
 0xbf4   :  { %v465_v35 = vadd.f32 1.0, %v795_v34 }
 0xbf6   :  { %796 = vrcp.f32 %v465_v35  ;;  %v477_v37 = vand.u32 2147483648, %v465_v35  ;;  %vm471_vm13 = vweird.f32 %v465_v35  ;;  %v475_v42 = vand.u32 2147483647, %v465_v35 }
 0xbf8   :  { %v478_v44 = vor.u32 1.1754944e-38, %v477_v37  ;;  %vm476_vm15 = vcmp.eq.f32.partialorder %v475_v42, 8.507059e+37 }
 0xbfc   :  { %v797_v36 = vpop.eup %796 }
 0xbfd   :  { %v467_v38 = vmul.f32 %v797_v36, %v465_v35  ;;  %vm472_vm12 = vweird.f32 %v797_v36 }
 0xbfe   :  { %vm473_vm14 = vmor %vm471_vm13, %vm472_vm12  ;;  %vm665_vm12 = vcmask 261127   ;;  %vm704_vm13 = vcmask 64512  }
 0xbff   :  { %v468_v39 = vsub.f32 1.0, %v467_v38 }
 0xc01   :  { %v469_v40 = vmul.f32 %v797_v36, %v468_v39 }
 0xc03   :  { %v470_v41 = vadd.f32 %v797_v36, %v469_v40 }
 0xc05   :  { %v474_v43 = vsel %vm473_vm14, %v797_v36, %v470_v41 }
 0xc06   :  { %v479_v46 = vsel %vm476_vm15, %v478_v44, %v474_v43 }
 0xc07   :  { %v485_v49 = vmul.f32 %v483_v48, %v479_v46 }
 0xc64   :  { %v488_v45 = vpop.permute.xlu0 %487 }
 0xc65   :  { %v490_v47 = vmul.f32 %v488_v45, %v479_v46 }
 0xc67   :  { %492 = vrot.lane.b32.xlu1 %v490_v47, %s873_s14 }
 0xcd9   :  { %v493_v50 = vpop.permute.xlu1 %492 }
 0xcda   :  { %v495_v51 = vadd.f32 %v493_v50, %v485_v49 }
 0xcdc   :  { %798 = vtanh.f32 %v495_v51  ;;  %v553_v14 = vrot.slane %v495_v51, 7  ;;  %v676_v51 = vld [vmem:[%s1014_s4 + $0x18] sm:$0xff] }
 0xcdd   :  { %696 = vmatpush.msra.mxu1 %v676_v51 }
 0xce2   :  { %v799_v52 = vpop.eup %798 }
 0xce3   :  { %498 = vrot.lane.b32.xlu2 %v799_v52, %s872_s13  ;;  %v675_v52 = vld [vmem:[%s1014_s4 + $0x10] sm:$0xff] }
 0xce4   :  { %697 = vmatpush.msra.mxu1 %v675_v52 }
 0xd3d   :  { %v499_v53 = vpop.permute.xlu2 %498 }
 0xd3e   :  { %v501_v54 = vmul.f32 %v499_v53, %v479_v46  ;;  %v674_v53 = vld [vmem:[%s1014_s4 + $0x8] sm:$0xff] }
 0xd3f   :  { %698 = vmatpush.msra.mxu1 %v674_v53 }
 0xd40   :  { %v503_v55 = vrot.slane %v501_v54, 5  ;;  %v651_v56 = vsel %vm650_vm0, %v649_v27, %v501_v54  ;;  %v673_v54 = vld [vmem:[%s1014_s4] sm:$0xff]  ;;  %s713_s4 = sshll.u32 %s1016_s6, 4  ;;  %s714_s4 = int_to_ptr.hbm [resolvable:$true] %s713_s4 }
 0xd41   :  { %699 = vmatpush.msra.mxu1 %v673_v54 }
 0xd42   :  { %504 = vrot.lane.b32.xlu0 %v503_v55, %s873_s14 }
 0xdb4   :  { %v505_v57 = vpop.permute.xlu0 %504 }
 0xdb5   :  { %736 = vmatmul.msk.f32.vlgmr.msrb.gmra.mxu3 %vm86_vm2, %v505_v57 }
 0xe38   :  { %v525_v58 = vpop.f32.mrf.mxu3 }
 0xe39   :  { %v529_v59 = vrot.slane %v525_v58, 2  ;;  %v751_v58 = vld [vmem:[%s1015_s5] ss:$0 sm:$0xff] }
 0xe3b   :  { %v531_v60 = vadd.f32 %v529_v59, %v933_v11 }
 0xe3d   :  { %800 = vtanh.f32 %v531_v60  ;;  %v737_v62 = vmul.f32 -1.442695, %v531_v60 }
 0xe3f   :  { %802 = vpow2.f32 %v737_v62 }
 0xe43   :  { %v801_v61 = vpop.eup %800 }
 0xe44   :  { %557 = vrot.lane.b32.xlu1 %v801_v61, %s872_s13 }
 0xe45   :  { %v803_v63 = vpop.eup %802 }
 0xe46   :  { %v535_v0 = vadd.f32 1.0, %v803_v63 }
 0xe48   :  { %804 = vrcp.f32 %v535_v0  ;;  %v547_v6 = vand.u32 2147483648, %v535_v0  ;;  %vm541_vm3 = vweird.f32 %v535_v0  ;;  %v545_v7 = vand.u32 2147483647, %v535_v0 }
 0xe4a   :  { %v548_v9 = vor.u32 1.1754944e-38, %v547_v6  ;;  %vm546_vm5 = vcmp.eq.f32.partialorder %v545_v7, 8.507059e+37 }
 0xe4e   :  { %v805_v1 = vpop.eup %804 }
 0xe4f   :  { %v537_v2 = vmul.f32 %v805_v1, %v535_v0  ;;  %vm542_vm1 = vweird.f32 %v805_v1 }
 0xe50   :  { %vm543_vm4 = vmor %vm541_vm3, %vm542_vm1 }
 0xe51   :  { %v538_v3 = vsub.f32 1.0, %v537_v2 }
 0xe53   :  { %v539_v4 = vmul.f32 %v805_v1, %v538_v3 }
 0xe55   :  { %v540_v5 = vadd.f32 %v805_v1, %v539_v4 }
 0xe57   :  { %v544_v8 = vsel %vm543_vm4, %v805_v1, %v540_v5 }
 0xe58   :  { %v549_v12 = vsel %vm546_vm5, %v548_v9, %v544_v8 }
 0xe59   :  { %v555_v15 = vmul.f32 %v553_v14, %v549_v12 }
 0xeb6   :  { %v558_v10 = vpop.permute.xlu1 %557 }
 0xeb7   :  { %v560_v13 = vmul.f32 %v558_v10, %v549_v12 }
 0xeb9   :  { %562 = vrot.lane.b32.xlu2 %v560_v13, %s873_s14 }
 0xf13   :  { %v563_v16 = vpop.permute.xlu2 %562 }
 0xf14   :  { %v565_v17 = vadd.f32 %v563_v16, %v555_v15 }
 0xf16   :  { %806 = vtanh.f32 %v565_v17  ;;  %v623_v42 = vrot.slane %v565_v17, 7 }
 0xf1c   :  { %v807_v18 = vpop.eup %806 }
 0xf1d   :  { %568 = vrot.lane.b32.xlu0 %v807_v18, %s872_s13 }
 0xf8f   :  { %v569_v19 = vpop.permute.xlu0 %568 }
 0xf90   :  { %v571_v20 = vmul.f32 %v569_v19, %v549_v12 }
 0xf92   :  { %v573_v21 = vrot.slane %v571_v20, 6  ;;  %v653_v22 = vsel %vm652_vm6, %v651_v56, %v571_v20 }
 0xf94   :  { %574 = vrot.lane.b32.xlu1 %v573_v21, %s873_s14 }
0x1006   :  { %v575_v23 = vpop.permute.xlu1 %574 }
0x1007   :  { %738 = vmatmul.msk.f32.vlgmr.msra.gmra.mxu0 %vm86_vm2, %v575_v23 }
0x1084   :  { %v595_v24 = vpop.f32.mrf.mxu0 }
0x1085   :  { %v599_v25 = vrot.slane %v595_v24, 1 }
0x1087   :  { %v601_v26 = vadd.f32 %v599_v25, %v933_v11 }
0x1089   :  { %808 = vtanh.f32 %v601_v26  ;;  %v739_v28 = vmul.f32 -1.442695, %v601_v26 }
0x108b   :  { %810 = vpow2.f32 %v739_v28 }
0x108f   :  { %v809_v27 = vpop.eup %808 }
0x1090   :  { %627 = vrot.lane.b32.xlu2 %v809_v27, %s872_s13 }
0x1091   :  { %v811_v29 = vpop.eup %810 }
0x1092   :  { %v605_v30 = vadd.f32 1.0, %v811_v29 }
0x1094   :  { %812 = vrcp.f32 %v605_v30  ;;  %v617_v36 = vand.u32 2147483648, %v605_v30  ;;  %vm611_vm8 = vweird.f32 %v605_v30  ;;  %v615_v38 = vand.u32 2147483647, %v605_v30 }
0x1096   :  { %v618_v39 = vor.u32 1.1754944e-38, %v617_v36  ;;  %vm616_vm10 = vcmp.eq.f32.partialorder %v615_v38, 8.507059e+37 }
0x109a   :  { %v813_v31 = vpop.eup %812 }
0x109b   :  { %v607_v32 = vmul.f32 %v813_v31, %v605_v30  ;;  %vm612_vm7 = vweird.f32 %v813_v31 }
0x109c   :  { %vm613_vm9 = vmor %vm611_vm8, %vm612_vm7 }
0x109d   :  { %v608_v33 = vsub.f32 1.0, %v607_v32 }
0x109f   :  { %v609_v34 = vmul.f32 %v813_v31, %v608_v33 }
0x10a1   :  { %v610_v35 = vadd.f32 %v813_v31, %v609_v34 }
0x10a3   :  { %v614_v11 = vsel %vm613_vm9, %v813_v31, %v610_v35 }
0x10a4   :  { %v619_v41 = vsel %vm616_vm10, %v618_v39, %v614_v11 }
0x10a5   :  { %v625_v43 = vmul.f32 %v623_v42, %v619_v41 }
0x10ea   :  { %v628_v40 = vpop.permute.xlu2 %627 }
0x10eb   :  { %v630_v37 = vmul.f32 %v628_v40, %v619_v41 }
0x10ed   :  { %632 = vrot.lane.b32.xlu0 %v630_v37, %s873_s14 }
0x115f   :  { %v633_v44 = vpop.permute.xlu0 %632 }
0x1160   :  { %v635_v45 = vadd.f32 %v633_v44, %v625_v43 }
0x1162   :  { %814 = vtanh.f32 %v635_v45 }
0x1168   :  { %v815_v46 = vpop.eup %814 }
0x1169   :  { %638 = vrot.lane.b32.xlu1 %v815_v46, %s872_s13 }
0x1171   :  { %668 = vrot.lane.b32.xlu1 %v635_v45, %s874_s3 }
0x11db   :  { %v639_v47 = vpop.permute.xlu1 %638 }
0x11dc   :  { %v641_v48 = vmul.f32 %v639_v47, %v619_v41 }
0x11de   :  { %662 = vrot.lane.b32.xlu0 %v641_v48, %s873_s14  ;;  %v655_v49 = vsel %vm654_vm11, %v653_v22, %v641_v48 }
0x11df   :  { %657 = vrot.lane.b32.xlu2 %v655_v49, %s873_s14 }
0x11e3   :  { %v669_v50 = vpop.permute.xlu1 %668 }
0x11e4   :  { %671 = vst.msk [vmem:[#allocation5 - $0x7] sm:$0x80] %vm665_vm12, %v669_v50 }
0x1239   :  { %v658_v55 = vpop.permute.xlu2 %657 }
0x123a   :  { %660 = vst.msk [vmem:[#allocation3] sm:$0xff] %vm86_vm2, %v658_v55 }
0x1241   :  { %v672_v56 = vld [vmem:[#allocation3] sm:$0xff] }
0x1242   :  { %740 = vmatmul.msk.f32.vlgmr.msra.gmra.mxu1 %vm86_vm2, %v672_v56 }
0x1250   :  { %v663_v57 = vpop.permute.xlu0 %662 }
0x1251   :  { %666 = vst.msk [vmem:[#allocation4 - $0x7] sm:$0x80] %vm665_vm12, %v663_v57 }
0x12bf   :  { %v701_v59 = vpop.f32.mrf.mxu1 }
0x12c0   :  { %v702_v60 = vadd.f32 %v751_v58, %v701_v59 }
0x12c2   :  { %705 = vst.msk [vmem:[#allocation9] sm:$0xff] %vm704_vm13, %v702_v60 }
0x12c3   :  { %716 = dma.vmem_to_hbm [thread:$0]  %s712_s26, 128, %s714_s4, [#allocation8]  }
0x12c4   :  { %866 = dma.done.wait [#allocation8], 128  }
0x12c5   :  { %867 = vsyncadd [#allocation8], 4294967168 }
0x12c6   :  { %721 = vsyncpa [#allocation7], 1 }
0x12c7   :  { %722 = vsyncpa [#allocation8], 1 }

</bundles_post_ra>
